<compile_context>
chip_gen: v7x
topology: tpu7x:2x2x1
jax: 0.10.0
libtpu: 0.0.40
codegen_flags: <defaults>
</compile_context>

<pallas_src>
import functools

import jax
import jax.numpy as jnp
import numpy as np
from jax import lax
from jax.experimental import pallas as pl
from jax.experimental.pallas import tpu as pltpu


def _match_kernel(x_ref, w1_ref, b1_ref, w2_ref, b2_ref, out_ref, *,
                  mobile_num, relay_num, compute_dtype):
    """One grid step over a (block_b, num_input) slab of feature vectors.

    x_ref  : (block_b, num_input)
    w1_ref : (num_input, hidden)    b1_ref : (1, hidden)
    w2_ref : (hidden, out_dim)      b2_ref : (1, out_dim)
    out_ref: (block_b, out_dim)     out_dim == mobile_num * relay_num
    """
    x = x_ref[...]
    w1 = w1_ref[...]
    w2 = w2_ref[...]
    if compute_dtype != jnp.float32:      # optional bf16 MXU path (v5e win)
        x = x.astype(compute_dtype)
        w1 = w1.astype(compute_dtype)
        w2 = w2.astype(compute_dtype)

    # Layer 1: MXU matmul, VPU broadcast bias add, ReLU.
    h = jnp.dot(x, w1, preferred_element_type=jnp.float32)
    h = jnp.maximum(h + b1_ref[...], 0.0)
    if compute_dtype != jnp.float32:
        h = h.astype(compute_dtype)
    # Layer 2: (block_b, out_dim) logits.
    logits = jnp.dot(h, w2, preferred_element_type=jnp.float32) + b2_ref[...]

    bb, out_dim = logits.shape
    lane = lax.broadcasted_iota(jnp.int32, (bb, out_dim), 1)

    # Grouped (per-mobile) softmax over the relay axis, vectorized: group
    # max / sum via full-width masked reductions (mobile_num is small so the
    # unrolled loops stay cheap), then a single exp / reciprocal / store.
    gmax = jnp.zeros_like(logits)
    for m in range(mobile_num):
        lo = m * relay_num
        mask = (lane >= lo) & (lane < lo + relay_num)
        mx = jnp.max(jnp.where(mask, logits, -jnp.inf), axis=-1, keepdims=True)
        gmax = jnp.where(mask, mx, gmax)

    e = jnp.exp(logits - gmax)                       # single EUP exp pass

    denom = jnp.ones_like(e)
    for m in range(mobile_num):
        lo = m * relay_num
        mask = (lane >= lo) & (lane < lo + relay_num)
        s = jnp.sum(jnp.where(mask, e, 0.0), axis=-1, keepdims=True)
        denom = jnp.where(mask, s, denom)

    # EUP reciprocal (otherwise-idle slot) + one Newton step -> ~f32 accuracy.
    r = pl.reciprocal(denom, approx=True)
    r = r * (2.0 - denom * r)
    out_ref[...] = e * r                             # single full-width store


def _round_up(x, m):
    return ((x + m - 1) // m) * m


@functools.partial(
    jax.jit,
    static_argnames=("mobile_num", "relay_num", "block_b_max",
                     "use_bf16_matmul"))
def match_forward_batched(xs, w1, b1, w2, b2, *, mobile_num, relay_num,
                          block_b_max=256, use_bf16_matmul=False):
    """Batched forward: xs (batch, num_input) -> (batch, mobile*relay).

    Each row is the PyTorch module's forward applied independently.
    """
    xs = jnp.asarray(xs, jnp.float32)
    w1 = jnp.asarray(w1, jnp.float32)
    b1 = jnp.asarray(b1, jnp.float32)
    w2 = jnp.asarray(w2, jnp.float32)
    b2 = jnp.asarray(b2, jnp.float32)

    batch, num_input = xs.shape
    hidden = w1.shape[1]
    out_dim = mobile_num * relay_num
    assert w2.shape == (hidden, out_dim)

    # Batch tile: fill the MXU M dimension (up to block_b_max rows), but keep
    # >= 2 grid steps whenever the batch allows so the "parallel" axis shards
    # across both v7x TensorCores.  Per-block VMEM is < 1 MiB at 256 rows.
    b_pad = _round_up(batch, 8)
    block_b = min(block_b_max, b_pad)
    if b_pad >= 16:
        block_b = min(block_b, max(8, (b_pad // 2) // 8 * 8))
    b_pad = _round_up(b_pad, block_b)

    if b_pad != batch:
        xs = jnp.pad(xs, ((0, b_pad - batch), (0, 0)))

    grid = (b_pad // block_b,)
    compute_dtype = jnp.bfloat16 if use_bf16_matmul else jnp.float32
    kernel = functools.partial(_match_kernel, mobile_num=mobile_num,
                               relay_num=relay_num,
                               compute_dtype=compute_dtype)

    b1_2d = b1.reshape(1, hidden)
    b2_2d = b2.reshape(1, out_dim)

    flops = (2 * b_pad * (num_input * hidden + hidden * out_dim)
             + 10 * b_pad * out_dim)
    bytes_accessed = 4 * (b_pad * num_input + w1.size + b1.size + w2.size
                          + b2.size + b_pad * out_dim)

    out = pl.pallas_call(
        kernel,
        out_shape=jax.ShapeDtypeStruct((b_pad, out_dim), jnp.float32),
        grid=grid,
        in_specs=[
            pl.BlockSpec((block_b, num_input), lambda i: (i, 0)),
            pl.BlockSpec((num_input, hidden), lambda i: (0, 0)),
            pl.BlockSpec((1, hidden), lambda i: (0, 0)),
            pl.BlockSpec((hidden, out_dim), lambda i: (0, 0)),
            pl.BlockSpec((1, out_dim), lambda i: (0, 0)),
        ],
        out_specs=pl.BlockSpec((block_b, out_dim), lambda i: (i, 0)),
        compiler_params=pltpu.CompilerParams(
            dimension_semantics=("parallel",)),
        cost_estimate=pl.CostEstimate(
            flops=int(flops),
            transcendentals=int(2 * b_pad * out_dim),  # exp + reciprocal
            bytes_accessed=int(bytes_accessed)),
    )(xs, w1, b1_2d, w2, b2_2d)
    return out[:batch]


def match_forward(x, w1, b1, w2, b2, mobile_num, relay_num):
    """Single feature vector (exact module semantics): (num_input,) -> (M*R,)."""
    out = match_forward_batched(x[None, :], w1, b1, w2, b2,
                                mobile_num=mobile_num, relay_num=relay_num)
    return out[0]


def match_reference(x, w1, b1, w2, b2, mobile_num, relay_num):
    h = jnp.maximum(x @ w1 + b1, 0.0)
    logits = h @ w2 + b2
    m = jax.nn.softmax(logits.reshape(mobile_num, relay_num), axis=1)
    return m.reshape(-1)


if __name__ == "__main__":
    mobile_num, relay_num = 4, 4
    num_input, hidden_size = 32, 256

    key = jax.random.PRNGKey(0)
    kx, kxs, k1, kb1, k2, kb2 = jax.random.split(key, 6)

    bound1 = 1.0 / np.sqrt(num_input)
    w1 = jax.random.uniform(k1, (num_input, hidden_size), jnp.float32,
                            -bound1, bound1)
    b1 = jax.random.uniform(kb1, (hidden_size,), jnp.float32, -bound1, bound1)
    bound2 = 1.0 / np.sqrt(hidden_size)
    w2 = jax.random.uniform(k2, (hidden_size, mobile_num * relay_num),
                            jnp.float32, -bound2, bound2)
    b2 = jax.random.uniform(kb2, (mobile_num * relay_num,), jnp.float32,
                            -bound2, bound2)

    # Single-vector forward (exact module semantics).
    x = jax.random.normal(kx, (num_input,), dtype=jnp.float32)
    out1 = jax.block_until_ready(
        match_forward(x, w1, b1, w2, b2, mobile_num, relay_num))
    ref1 = match_reference(x, w1, b1, w2, b2, mobile_num, relay_num)

    # Batched forward: batch=13 exercises padding (to 16) and a 2-step
    # "parallel" grid (block_b capped at 8 here so v7x gets 2 cores of work).
    batch = 13
    xs = jax.random.normal(kxs, (batch, num_input), dtype=jnp.float32)
    out2 = jax.block_until_ready(
        match_forward_batched(xs, w1, b1, w2, b2,
                              mobile_num=mobile_num, relay_num=relay_num))
    ref2 = jax.vmap(
        lambda v: match_reference(v, w1, b1, w2, b2, mobile_num, relay_num))(xs)

    np.testing.assert_allclose(np.asarray(out1), np.asarray(ref1),
                               rtol=2e-3, atol=2e-3)
    np.testing.assert_allclose(np.asarray(out2), np.asarray(ref2),
                               rtol=2e-3, atol=2e-3)

    # Larger batch: exercises a wide MXU M tile (block_b=64, 2 grid steps).
    batch3 = 128
    xs3 = jax.random.normal(kxs, (batch3, num_input), dtype=jnp.float32)
    out3 = jax.block_until_ready(
        match_forward_batched(xs3, w1, b1, w2, b2,
                              mobile_num=mobile_num, relay_num=relay_num))
    ref3 = jax.vmap(
        lambda v: match_reference(v, w1, b1, w2, b2, mobile_num, relay_num))(xs3)
    np.testing.assert_allclose(np.asarray(out3), np.asarray(ref3),
                               rtol=2e-3, atol=2e-3)

    # Optional bf16-MXU path (v5e lever): looser tolerance, softmax still f32.
    out_bf16 = jax.block_until_ready(
        match_forward_batched(xs, w1, b1, w2, b2,
                              mobile_num=mobile_num, relay_num=relay_num,
                              use_bf16_matmul=True))
    np.testing.assert_allclose(np.asarray(out_bf16), np.asarray(ref2),
                               rtol=5e-2, atol=5e-2)

    # Internal consistency: each relay group of probabilities sums to 1.
    group_sums = np.asarray(out2).reshape(batch, mobile_num, relay_num).sum(-1)
    np.testing.assert_allclose(group_sums, np.ones_like(group_sums),
                               rtol=1e-5, atol=1e-5)

    print("KERNEL_OK")
</pallas_src>

<mosaic_0001>
module attributes {stable_mosaic.version = 11 : i64} {
  func.func @_match_kernel(%arg0: i32, %arg1: memref<8x32xf32, #tpu.memory_space<vmem>>, %arg2: memref<32x256xf32, #tpu.memory_space<vmem>>, %arg3: memref<1x256xf32, #tpu.memory_space<vmem>>, %arg4: memref<256x16xf32, #tpu.memory_space<vmem>>, %arg5: memref<1x16xf32, #tpu.memory_space<vmem>>, %arg6: memref<8x16xf32, #tpu.memory_space<vmem>>) attributes {dimension_semantics = [#tpu.dimension_semantics<parallel>], iteration_bounds = array<i64: 1>, scalar_prefetch = 0 : i64, scratch_operands = 0 : i64, tpu.core_type = #tpu.core_type<tc>, window_params = [{transform_indices = @transform_0, window_bounds = array<i64: 8, 32>}, {pipeline_mode = #tpu.pipeline_mode<synchronous>, transform_indices = @transform_1, window_bounds = array<i64: 32, 256>}, {pipeline_mode = #tpu.pipeline_mode<synchronous>, transform_indices = @transform_2, window_bounds = array<i64: 1, 256>}, {pipeline_mode = #tpu.pipeline_mode<synchronous>, transform_indices = @transform_3, window_bounds = array<i64: 256, 16>}, {pipeline_mode = #tpu.pipeline_mode<synchronous>, transform_indices = @transform_4, window_bounds = array<i64: 1, 16>}, {transform_indices = @transform_5, window_bounds = array<i64: 8, 16>}]} {
    %c0 = arith.constant 0 : index
    %c0_0 = arith.constant 0 : index
    %0 = vector.load %arg1[%c0, %c0_0] : memref<8x32xf32, #tpu.memory_space<vmem>>, vector<8x32xf32>
    %c0_1 = arith.constant 0 : index
    %c0_2 = arith.constant 0 : index
    %1 = vector.load %arg2[%c0_1, %c0_2] : memref<32x256xf32, #tpu.memory_space<vmem>>, vector<32x256xf32>
    %c0_3 = arith.constant 0 : index
    %c0_4 = arith.constant 0 : index
    %2 = vector.load %arg4[%c0_3, %c0_4] : memref<256x16xf32, #tpu.memory_space<vmem>>, vector<256x16xf32>
    %cst = arith.constant dense<0.000000e+00> : vector<8x256xf32>
    %3 = tpu.matmul %0, %1, %cst {dimension_numbers = #tpu.dot_dimension_numbers<[1], [0], [0], [1], [0, 0, 1, 1], [], []>} : vector<8x32xf32>, vector<32x256xf32>, vector<8x256xf32> -> vector<8x256xf32>
    %c0_5 = arith.constant 0 : index
    %c0_6 = arith.constant 0 : index
    %4 = vector.load %arg3[%c0_5, %c0_6] : memref<1x256xf32, #tpu.memory_space<vmem>>, vector<1x256xf32>
    %5 = vector.broadcast %4 : vector<1x256xf32> to vector<8x256xf32>
    %6 = arith.addf %3, %5 : vector<8x256xf32>
    %cst_7 = arith.constant 0.000000e+00 : f32
    %7 = vector.broadcast %cst_7 : f32 to vector<8x256xf32>
    %8 = arith.maximumf %6, %7 : vector<8x256xf32>
    %cst_8 = arith.constant dense<0.000000e+00> : vector<8x16xf32>
    %9 = tpu.matmul %8, %2, %cst_8 {dimension_numbers = #tpu.dot_dimension_numbers<[1], [0], [0], [1], [0, 0, 1, 1], [], []>} : vector<8x256xf32>, vector<256x16xf32>, vector<8x16xf32> -> vector<8x16xf32>
    %c0_9 = arith.constant 0 : index
    %c0_10 = arith.constant 0 : index
    %10 = vector.load %arg5[%c0_9, %c0_10] : memref<1x16xf32, #tpu.memory_space<vmem>>, vector<1x16xf32>
    %11 = vector.broadcast %10 : vector<1x16xf32> to vector<8x16xf32>
    %12 = arith.addf %9, %11 : vector<8x16xf32>
    %13 = tpu.iota {dimensions = array<i32: 1>} : vector<8x16xi32>
    %cst_11 = arith.constant 0.000000e+00 : f32
    %14 = vector.broadcast %cst_11 : f32 to vector<8x16xf32>
    %c0_i32 = arith.constant 0 : i32
    %15 = vector.broadcast %c0_i32 : i32 to vector<8x16xi32>
    %16 = arith.cmpi sge, %13, %15 : vector<8x16xi32>
    %c4_i32 = arith.constant 4 : i32
    %17 = vector.broadcast %c4_i32 : i32 to vector<8x16xi32>
    %18 = arith.cmpi slt, %13, %17 : vector<8x16xi32>
    %19 = arith.andi %16, %18 : vector<8x16xi1>
    %cst_12 = arith.constant 0xFF800000 : f32
    %20 = vector.broadcast %cst_12 : f32 to vector<8x16xf32>
    %21 = arith.select %19, %12, %20 : vector<8x16xi1>, vector<8x16xf32>
    %cst_13 = arith.constant dense<0xFF800000> : vector<8xf32>
    %22 = vector.multi_reduction <maximumf>, %21, %cst_13 [1] : vector<8x16xf32> to vector<8xf32>
    %23 = vector.shape_cast %22 : vector<8xf32> to vector<8x1xf32>
    %24 = vector.shape_cast %23 : vector<8x1xf32> to vector<8x1xf32>
    %25 = vector.broadcast %24 : vector<8x1xf32> to vector<8x16xf32>
    %26 = arith.select %19, %25, %14 : vector<8x16xi1>, vector<8x16xf32>
    %c4_i32_14 = arith.constant 4 : i32
    %27 = vector.broadcast %c4_i32_14 : i32 to vector<8x16xi32>
    %28 = arith.cmpi sge, %13, %27 : vector<8x16xi32>
    %c8_i32 = arith.constant 8 : i32
    %29 = vector.broadcast %c8_i32 : i32 to vector<8x16xi32>
    %30 = arith.cmpi slt, %13, %29 : vector<8x16xi32>
    %31 = arith.andi %28, %30 : vector<8x16xi1>
    %cst_15 = arith.constant 0xFF800000 : f32
    %32 = vector.broadcast %cst_15 : f32 to vector<8x16xf32>
    %33 = arith.select %31, %12, %32 : vector<8x16xi1>, vector<8x16xf32>
    %cst_16 = arith.constant dense<0xFF800000> : vector<8xf32>
    %34 = vector.multi_reduction <maximumf>, %33, %cst_16 [1] : vector<8x16xf32> to vector<8xf32>
    %35 = vector.shape_cast %34 : vector<8xf32> to vector<8x1xf32>
    %36 = vector.shape_cast %35 : vector<8x1xf32> to vector<8x1xf32>
    %37 = vector.broadcast %36 : vector<8x1xf32> to vector<8x16xf32>
    %38 = arith.select %31, %37, %26 : vector<8x16xi1>, vector<8x16xf32>
    %c8_i32_17 = arith.constant 8 : i32
    %39 = vector.broadcast %c8_i32_17 : i32 to vector<8x16xi32>
    %40 = arith.cmpi sge, %13, %39 : vector<8x16xi32>
    %c12_i32 = arith.constant 12 : i32
    %41 = vector.broadcast %c12_i32 : i32 to vector<8x16xi32>
    %42 = arith.cmpi slt, %13, %41 : vector<8x16xi32>
    %43 = arith.andi %40, %42 : vector<8x16xi1>
    %cst_18 = arith.constant 0xFF800000 : f32
    %44 = vector.broadcast %cst_18 : f32 to vector<8x16xf32>
    %45 = arith.select %43, %12, %44 : vector<8x16xi1>, vector<8x16xf32>
    %cst_19 = arith.constant dense<0xFF800000> : vector<8xf32>
    %46 = vector.multi_reduction <maximumf>, %45, %cst_19 [1] : vector<8x16xf32> to vector<8xf32>
    %47 = vector.shape_cast %46 : vector<8xf32> to vector<8x1xf32>
    %48 = vector.shape_cast %47 : vector<8x1xf32> to vector<8x1xf32>
    %49 = vector.broadcast %48 : vector<8x1xf32> to vector<8x16xf32>
    %50 = arith.select %43, %49, %38 : vector<8x16xi1>, vector<8x16xf32>
    %c12_i32_20 = arith.constant 12 : i32
    %51 = vector.broadcast %c12_i32_20 : i32 to vector<8x16xi32>
    %52 = arith.cmpi sge, %13, %51 : vector<8x16xi32>
    %c16_i32 = arith.constant 16 : i32
    %53 = vector.broadcast %c16_i32 : i32 to vector<8x16xi32>
    %54 = arith.cmpi slt, %13, %53 : vector<8x16xi32>
    %55 = arith.andi %52, %54 : vector<8x16xi1>
    %cst_21 = arith.constant 0xFF800000 : f32
    %56 = vector.broadcast %cst_21 : f32 to vector<8x16xf32>
    %57 = arith.select %55, %12, %56 : vector<8x16xi1>, vector<8x16xf32>
    %cst_22 = arith.constant dense<0xFF800000> : vector<8xf32>
    %58 = vector.multi_reduction <maximumf>, %57, %cst_22 [1] : vector<8x16xf32> to vector<8xf32>
    %59 = vector.shape_cast %58 : vector<8xf32> to vector<8x1xf32>
    %60 = vector.shape_cast %59 : vector<8x1xf32> to vector<8x1xf32>
    %61 = vector.broadcast %60 : vector<8x1xf32> to vector<8x16xf32>
    %62 = arith.select %55, %61, %50 : vector<8x16xi1>, vector<8x16xf32>
    %63 = arith.subf %12, %62 : vector<8x16xf32>
    %64 = math.exp %63 : vector<8x16xf32>
    %cst_23 = arith.constant 1.000000e+00 : f32
    %65 = vector.broadcast %cst_23 : f32 to vector<8x16xf32>
    %c0_i32_24 = arith.constant 0 : i32
    %66 = vector.broadcast %c0_i32_24 : i32 to vector<8x16xi32>
    %67 = arith.cmpi sge, %13, %66 : vector<8x16xi32>
    %c4_i32_25 = arith.constant 4 : i32
    %68 = vector.broadcast %c4_i32_25 : i32 to vector<8x16xi32>
    %69 = arith.cmpi slt, %13, %68 : vector<8x16xi32>
    %70 = arith.andi %67, %69 : vector<8x16xi1>
    %cst_26 = arith.constant 0.000000e+00 : f32
    %71 = vector.broadcast %cst_26 : f32 to vector<8x16xf32>
    %72 = arith.select %70, %64, %71 : vector<8x16xi1>, vector<8x16xf32>
    %cst_27 = arith.constant dense<0.000000e+00> : vector<8xf32>
    %73 = vector.multi_reduction <add>, %72, %cst_27 [1] : vector<8x16xf32> to vector<8xf32>
    %74 = vector.shape_cast %73 : vector<8xf32> to vector<8x1xf32>
    %75 = vector.shape_cast %74 : vector<8x1xf32> to vector<8x1xf32>
    %76 = vector.broadcast %75 : vector<8x1xf32> to vector<8x16xf32>
    %77 = arith.select %70, %76, %65 : vector<8x16xi1>, vector<8x16xf32>
    %c4_i32_28 = arith.constant 4 : i32
    %78 = vector.broadcast %c4_i32_28 : i32 to vector<8x16xi32>
    %79 = arith.cmpi sge, %13, %78 : vector<8x16xi32>
    %c8_i32_29 = arith.constant 8 : i32
    %80 = vector.broadcast %c8_i32_29 : i32 to vector<8x16xi32>
    %81 = arith.cmpi slt, %13, %80 : vector<8x16xi32>
    %82 = arith.andi %79, %81 : vector<8x16xi1>
    %cst_30 = arith.constant 0.000000e+00 : f32
    %83 = vector.broadcast %cst_30 : f32 to vector<8x16xf32>
    %84 = arith.select %82, %64, %83 : vector<8x16xi1>, vector<8x16xf32>
    %cst_31 = arith.constant dense<0.000000e+00> : vector<8xf32>
    %85 = vector.multi_reduction <add>, %84, %cst_31 [1] : vector<8x16xf32> to vector<8xf32>
    %86 = vector.shape_cast %85 : vector<8xf32> to vector<8x1xf32>
    %87 = vector.shape_cast %86 : vector<8x1xf32> to vector<8x1xf32>
    %88 = vector.broadcast %87 : vector<8x1xf32> to vector<8x16xf32>
    %89 = arith.select %82, %88, %77 : vector<8x16xi1>, vector<8x16xf32>
    %c8_i32_32 = arith.constant 8 : i32
    %90 = vector.broadcast %c8_i32_32 : i32 to vector<8x16xi32>
    %91 = arith.cmpi sge, %13, %90 : vector<8x16xi32>
    %c12_i32_33 = arith.constant 12 : i32
    %92 = vector.broadcast %c12_i32_33 : i32 to vector<8x16xi32>
    %93 = arith.cmpi slt, %13, %92 : vector<8x16xi32>
    %94 = arith.andi %91, %93 : vector<8x16xi1>
    %cst_34 = arith.constant 0.000000e+00 : f32
    %95 = vector.broadcast %cst_34 : f32 to vector<8x16xf32>
    %96 = arith.select %94, %64, %95 : vector<8x16xi1>, vector<8x16xf32>
    %cst_35 = arith.constant dense<0.000000e+00> : vector<8xf32>
    %97 = vector.multi_reduction <add>, %96, %cst_35 [1] : vector<8x16xf32> to vector<8xf32>
    %98 = vector.shape_cast %97 : vector<8xf32> to vector<8x1xf32>
    %99 = vector.shape_cast %98 : vector<8x1xf32> to vector<8x1xf32>
    %100 = vector.broadcast %99 : vector<8x1xf32> to vector<8x16xf32>
    %101 = arith.select %94, %100, %89 : vector<8x16xi1>, vector<8x16xf32>
    %c12_i32_36 = arith.constant 12 : i32
    %102 = vector.broadcast %c12_i32_36 : i32 to vector<8x16xi32>
    %103 = arith.cmpi sge, %13, %102 : vector<8x16xi32>
    %c16_i32_37 = arith.constant 16 : i32
    %104 = vector.broadcast %c16_i32_37 : i32 to vector<8x16xi32>
    %105 = arith.cmpi slt, %13, %104 : vector<8x16xi32>
    %106 = arith.andi %103, %105 : vector<8x16xi1>
    %cst_38 = arith.constant 0.000000e+00 : f32
    %107 = vector.broadcast %cst_38 : f32 to vector<8x16xf32>
    %108 = arith.select %106, %64, %107 : vector<8x16xi1>, vector<8x16xf32>
    %cst_39 = arith.constant dense<0.000000e+00> : vector<8xf32>
    %109 = vector.multi_reduction <add>, %108, %cst_39 [1] : vector<8x16xf32> to vector<8xf32>
    %110 = vector.shape_cast %109 : vector<8xf32> to vector<8x1xf32>
    %111 = vector.shape_cast %110 : vector<8x1xf32> to vector<8x1xf32>
    %112 = vector.broadcast %111 : vector<8x1xf32> to vector<8x16xf32>
    %113 = arith.select %106, %112, %101 : vector<8x16xi1>, vector<8x16xf32>
    %114 = tpu.reciprocal %113 {approx = true} : vector<8x16xf32> -> vector<8x16xf32>
    %115 = arith.mulf %113, %114 : vector<8x16xf32>
    %cst_40 = arith.constant 2.000000e+00 : f32
    %116 = vector.broadcast %cst_40 : f32 to vector<8x16xf32>
    %117 = arith.subf %116, %115 : vector<8x16xf32>
    %118 = arith.mulf %114, %117 : vector<8x16xf32>
    %119 = arith.mulf %64, %118 : vector<8x16xf32>
    %c0_41 = arith.constant 0 : index
    %c0_42 = arith.constant 0 : index
    %120 = vector.load %arg6[%c0_41, %c0_42] : memref<8x16xf32, #tpu.memory_space<vmem>>, vector<8x16xf32>
    tpu.vector_store %arg6[%c0_41, %c0_42], %119 {strides = array<i32>} : memref<8x16xf32, #tpu.memory_space<vmem>>, vector<8x16xf32>,
    return
  }
  func.func @transform_0(%arg0: i32) -> (i32, i32) {
    %c0_i32 = arith.constant 0 : i32
    %c0_i32_0 = arith.constant 0 : i32
    return %arg0, %c0_i32 : i32, i32
  }
  func.func @transform_1(%arg0: i32) -> (i32, i32) {
    %c0_i32 = arith.constant 0 : i32
    %c0_i32_0 = arith.constant 0 : i32
    %c0_i32_1 = arith.constant 0 : i32
    return %c0_i32, %c0_i32_0 : i32, i32
  }
  func.func @transform_2(%arg0: i32) -> (i32, i32) {
    %c0_i32 = arith.constant 0 : i32
    %c0_i32_0 = arith.constant 0 : i32
    %c0_i32_1 = arith.constant 0 : i32
    return %c0_i32, %c0_i32_0 : i32, i32
  }
  func.func @transform_3(%arg0: i32) -> (i32, i32) {
    %c0_i32 = arith.constant 0 : i32
    %c0_i32_0 = arith.constant 0 : i32
    %c0_i32_1 = arith.constant 0 : i32
    return %c0_i32, %c0_i32_0 : i32, i32
  }
  func.func @transform_4(%arg0: i32) -> (i32, i32) {
    %c0_i32 = arith.constant 0 : i32
    %c0_i32_0 = arith.constant 0 : i32
    %c0_i32_1 = arith.constant 0 : i32
    return %c0_i32, %c0_i32_0 : i32, i32
  }
  func.func @transform_5(%arg0: i32) -> (i32, i32) {
    %c0_i32 = arith.constant 0 : i32
    %c0_i32_0 = arith.constant 0 : i32
    return %arg0, %c0_i32 : i32, i32
  }
}

</mosaic_0001>

<bundles_post_ra>
// kernel: match_forward_batched.1
= control target key start
LH: loop header
LB: loop body
LE: loop exit
PB: predicated region body
PF: predicated region fallthrough
CT: control target
= control target key end

     0   :  { %v377_v3 = vmov 0.0   ;;  %vm73_vm0 = vcmask 261120   ;;  %v63_v62 = vlaneseq  ;;  %vm233_vm9 = vcmask 130048   ;;  %s589_s1 = inlined_call_operand.vmem [shape: f32[32,256], index: 1, kind: input, shape index: {}]   ;;  %s590_s3 = inlined_call_operand.vmem [shape: f32[256,16], index: 3, kind: input, shape index: {}]   ;;  %s591_s0 = inlined_call_operand.vmem [shape: f32[8,32], index: 0, kind: input, shape index: {}]   ;;  %s592_s2 = inlined_call_operand.vmem [shape: f32[1,256], index: 2, kind: input, shape index: {}]   ;;  %s593_s4 = inlined_call_operand.vmem [shape: f32[1,16], index: 4, kind: input, shape index: {}]   ;;  %s594_s5 = inlined_call_operand.vmem [shape: f32[8,16], index: 5, kind: output, shape index: {}]  }
   0x1   :  { %v22_v0 = vld [vmem:[%s589_s1 + $0x8] sm:$0xff]  ;;  %v24_v1 = vld [vmem:[%s589_s1 + $0x18] sm:$0xff]  ;;  %v21_v2 = vld [vmem:[%s589_s1] sm:$0xff]  ;;  %141 = vmatprep.mubr.f32.mxu0 %v377_v3 }
   0x2   :  { %v332_v4 = vpack.c.bf16 %v24_v1, %v22_v0  ;;  %v23_v5 = vld [vmem:[%s589_s1 + $0x10] sm:$0xff]  ;;  %v26_v6 = vld [vmem:[%s589_s1 + $0x28] sm:$0xff]  ;;  %v28_v7 = vld [vmem:[%s589_s1 + $0x38] sm:$0xff]  ;;  %v64_v63 = vshrl.u32 %v63_v62, 7 }
   0x3   :  { %v334_v8 = vpack.c.bf16 %v23_v5, %v21_v2  ;;  %v336_v9 = vpack.c.bf16 %v28_v7, %v26_v6  ;;  %v25_v10 = vld [vmem:[%s589_s1 + $0x20] sm:$0xff]  ;;  %v27_v11 = vld [vmem:[%s589_s1 + $0x30] sm:$0xff]  ;;  %v46_v13 = vld [vmem:[%s590_s3 + $0x88] sm:$0xff] }
   0x4   :  { %333 = vmatprep.subr.bf16.mxu0 %v332_v4  ;;  %v45_v12 = vld [vmem:[%s590_s3 + $0x80] sm:$0xff]  ;;  %v338_v15 = vpack.c.bf16 %v27_v11, %v25_v10  ;;  %v30_v17 = vld [vmem:[%s590_s3 + $0x8] sm:$0xff]  ;;  %v47_v18 = vld [vmem:[%s590_s3 + $0x90] sm:$0xff]  ;;  %v65_v0 = vsub.s32 0, %v64_v63  ;;  %v69_v2 = vsub.s32 1, %v64_v63  ;;  %v228_v11 = vand.u32 127, %v63_v62 }
   0x5   :  { %v29_v14 = vld [vmem:[%s590_s3] sm:$0xff]  ;;  %335 = vmatpush1.bf16.msra.mxu0 %v334_v8  ;;  %v340_v16 = vpack.c.bf16 %v46_v13, %v45_v12  ;;  %v48_v19 = vld [vmem:[%s590_s3 + $0x98] sm:$0xff]  ;;  %v31_v22 = vld [vmem:[%s590_s3 + $0x10] sm:$0xff] }
   0x6   :  { %337 = vmatprep.subr.bf16.mxu0 %v336_v9  ;;  %v342_v20 = vpack.c.bf16 %v30_v17, %v29_v14  ;;  %v344_v21 = vpack.c.bf16 %v48_v19, %v47_v18  ;;  %v32_v23 = vld [vmem:[%s590_s3 + $0x18] sm:$0xff]  ;;  %v49_v24 = vld [vmem:[%s590_s3 + $0xa0] sm:$0xff]  ;;  %v50_v25 = vld [vmem:[%s590_s3 + $0xa8] sm:$0xff]  ;;  %vm246_vm1 = vcmp.ge.s32.totalorder %v228_v11, 8  ;;  %vm247_vm2 = vcmp.lt.s32.totalorder %v228_v11, 12 }
   0x7   :  { %341 = vmatprep.subr.bf16.mxu1 %v340_v16  ;;  %v346_v26 = vpack.c.bf16 %v32_v23, %v31_v22  ;;  %v20_v27 = vld [vmem:[%s591_s0] sm:$0xff]  ;;  %v348_v28 = vpack.c.bf16 %v50_v25, %v49_v24  ;;  %v34_v30 = vld [vmem:[%s590_s3 + $0x28] sm:$0xff]  ;;  %v51_v31 = vld [vmem:[%s590_s3 + $0xb0] sm:$0xff]  ;;  %vm254_vm3 = vcmp.ge.s32.totalorder %v228_v11, 12  ;;  %vm255_vm4 = vcmp.lt.s32.totalorder %v228_v11, 16 }
   0x8   :  { %343 = vmatpush3.bf16.msra.mxu1 %v342_v20  ;;  %v33_v29 = vld [vmem:[%s590_s3 + $0x20] sm:$0xff]  ;;  %v52_v32 = vld [vmem:[%s590_s3 + $0xb8] sm:$0xff]  ;;  %v35_v35 = vld [vmem:[%s590_s3 + $0x30] sm:$0xff]  ;;  %vm238_vm5 = vcmp.ge.s32.totalorder %v228_v11, 4  ;;  %vm239_vm6 = vcmp.lt.s32.totalorder %v228_v11, 8  ;;  %vm230_vm8 = vcmp.lt.s32.totalorder %v228_v11, 4 }
   0x9   :  { %339 = vmatpush1.bf16.msra.mxu0 %v338_v15  ;;  %345 = vmatprep.subr.bf16.mxu1 %v344_v21  ;;  %v350_v33 = vpack.c.bf16 %v34_v30, %v33_v29  ;;  %v352_v34 = vpack.c.bf16 %v52_v32, %v51_v31  ;;  %v36_v36 = vld [vmem:[%s590_s3 + $0x38] sm:$0xff]  ;;  %v53_v37 = vld [vmem:[%s590_s3 + $0xc0] sm:$0xff]  ;;  %v54_v38 = vld [vmem:[%s590_s3 + $0xc8] sm:$0xff] }
   0xa   :  { %v354_v39 = vpack.c.bf16 %v36_v36, %v35_v35  ;;  %v356_v40 = vpack.c.bf16 %v54_v38, %v53_v37  ;;  %v37_v41 = vld [vmem:[%s590_s3 + $0x40] sm:$0xff]  ;;  %v38_v42 = vld [vmem:[%s590_s3 + $0x48] sm:$0xff]  ;;  %v55_v43 = vld [vmem:[%s590_s3 + $0xd0] sm:$0xff] }
   0xb   :  { %v56_v44 = vld [vmem:[%s590_s3 + $0xd8] sm:$0xff]  ;;  %v358_v45 = vpack.c.bf16 %v38_v42, %v37_v41  ;;  %v39_v47 = vld [vmem:[%s590_s3 + $0x50] sm:$0xff]  ;;  %v57_v49 = vld [vmem:[%s590_s3 + $0xe0] sm:$0xff] }
   0xc   :  { %295 = vmatmul.mubr.msk.f32.vlgmr.msra.gmra.mrb[0].mxu0 %vm73_vm0, %v20_v27  ;;  %347 = vmatpush3.bf16.msra.mxu1 %v346_v26  ;;  %v360_v46 = vpack.c.bf16 %v56_v44, %v55_v43  ;;  %v40_v48 = vld [vmem:[%s590_s3 + $0x58] sm:$0xff]  ;;  %v58_v50 = vld [vmem:[%s590_s3 + $0xe8] sm:$0xff]  ;;  %v41_v53 = vld [vmem:[%s590_s3 + $0x60] sm:$0xff] }
   0xd   :  { %349 = vmatprep.subr.bf16.mxu1 %v348_v28  ;;  %v362_v51 = vpack.c.bf16 %v40_v48, %v39_v47  ;;  %v364_v52 = vpack.c.bf16 %v58_v50, %v57_v49  ;;  %v42_v54 = vld [vmem:[%s590_s3 + $0x68] sm:$0xff]  ;;  %v59_v56 = vld [vmem:[%s590_s3 + $0xf0] sm:$0xff]  ;;  %v60_v57 = vld [vmem:[%s590_s3 + $0xf8] sm:$0xff] }
   0xe   :  { %v366_v55 = vpack.c.bf16 %v42_v54, %v41_v53  ;;  %v368_v58 = vpack.c.bf16 %v60_v57, %v59_v56  ;;  %v43_v59 = vld [vmem:[%s590_s3 + $0x70] sm:$0xff]  ;;  %v44_v60 = vld [vmem:[%s590_s3 + $0x78] sm:$0xff]  ;;  %v61_v1 = vld [vmem:[%s592_s2] sm:$0x3] }
   0xf   :  { %v370_v61 = vpack.c.bf16 %v44_v60, %v43_v59  ;;  %v66_v3 = vrot.slane %v61_v1, %v65_v0  ;;  %v70_v4 = vrot.slane %v61_v1, %v69_v2  ;;  %v296_v13 = vld [vmem:[%s593_s4] ss:$0 sm:$0xff]  ;;  %vm537_vm7 = vmand %vm246_vm1, %vm247_vm2 }
  0x10   :  { %351 = vmatpush3.bf16.msra.mxu1 %v350_v33  ;;  %vm541_vm10 = vmand %vm254_vm3, %vm255_vm4 }
  0x11   :  { %353 = vmatprep.subr.bf16.mxu1 %v352_v34  ;;  %vm545_vm11 = vmand %vm238_vm5, %vm239_vm6 }
  0x14   :  { %355 = vmatpush3.bf16.msra.mxu1 %v354_v39 }
  0x15   :  { %357 = vmatprep.subr.bf16.mxu1 %v356_v40 }
  0x18   :  { %359 = vmatpush3.bf16.msra.mxu1 %v358_v45 }
  0x19   :  { %361 = vmatprep.subr.bf16.mxu1 %v360_v46 }
  0x1c   :  { %363 = vmatpush3.bf16.msra.mxu1 %v362_v51 }
  0x1d   :  { %365 = vmatprep.subr.bf16.mxu1 %v364_v52 }
  0x20   :  { %367 = vmatpush3.bf16.msra.mxu1 %v366_v55 }
  0x21   :  { %369 = vmatprep.subr.bf16.mxu1 %v368_v58 }
  0x24   :  { %371 = vmatpush3.bf16.msra.mxu1 %v370_v61 }
  0xdf   :  { %v143_v5 = vpop.f32.mrb[0].mxu0 }
  0xe0   :  { %v144_v6 = vadd.f32 %v143_v5, %v66_v3  ;;  %v145_v7 = vpop.f32.mrb[1].mxu0 }
  0xe1   :  { %v146_v8 = vadd.f32 %v145_v7, %v70_v4 }
  0xe2   :  { %v148_v10 = vmax.f32 %v144_v6, 0.0 }
  0xe3   :  { %v149_v9 = vmax.f32 %v146_v8, 0.0 }
  0xe5   :  { %221 = vmatprep.mubr.f32.mxu1 %v149_v9 }
  0xe6   :  { %222 = vmatmul.mubr.f32.vlgmr.msra.gmra.mrb[0].mxu1 %v148_v10 }
 0x1b9   :  { %v329_v12 = vpop.f32.mrb[0].mxu1 }
 0x1ba   :  { %v330_v14 = vpop.f32.mrb[1].mxu1 }
 0x1bb   :  { %v331_v15 = vadd.f32 %v330_v14, %v329_v12 }
 0x1bd   :  { %v224_v17 = vadd.f32 %v331_v15, %v296_v13 }
 0x1bf   :  { %v249_v20 = vsel %vm537_vm7, %v224_v17, -inf  ;;  %v232_v21 = vsel %vm230_vm8, %v224_v17, -inf  ;;  %v257_v24 = vsel %vm541_vm10, %v224_v17, -inf  ;;  %v241_v25 = vsel %vm545_vm11, %v224_v17, -inf }
 0x1c0   :  { %v250_v22 = vsel %vm233_vm9, %v249_v20, -inf  ;;  %v234_v23 = vsel %vm233_vm9, %v232_v21, -inf  ;;  %v258_v26 = vsel %vm233_vm9, %v257_v24, -inf  ;;  %v242_v27 = vsel %vm233_vm9, %v241_v25, -inf }
 0x1c1   :  { %251 = vmax.xlane.f32.xlu1 %v250_v22  ;;  %235 = vmax.xlane.f32.xlu0 %v234_v23 }
 0x1c5   :  { %259 = vmax.xlane.f32.xlu1 %v258_v26  ;;  %243 = vmax.xlane.f32.xlu0 %v242_v27 }
 0x24e   :  { %v252_v28 = vpop.xlane.xlu1 %251  ;;  %v236_v29 = vpop.xlane.xlu0 %235 }
 0x24f   :  { %v237_v30 = vsel %vm230_vm8, %v236_v29, 0.0 }
 0x252   :  { %v244_v31 = vpop.xlane.xlu0 %243  ;;  %v260_v33 = vpop.xlane.xlu1 %259 }
 0x253   :  { %v245_v32 = vsel %vm545_vm11, %v244_v31, %v237_v30 }
 0x254   :  { %v253_v34 = vsel %vm537_vm7, %v252_v28, %v245_v32 }
 0x255   :  { %v261_v35 = vsel %vm541_vm10, %v260_v33, %v253_v34 }
 0x256   :  { %v262_v36 = vsub.f32 %v224_v17, %v261_v35 }
 0x258   :  { %v263_v37 = vmul.f32 1.442695, %v262_v36 }
 0x25a   :  { %373 = vpow2.f32 %v263_v37 }
 0x264   :  { %v374_v38 = vpop.eup %373 }
 0x265   :  { %v270_v39 = vsel %vm545_vm11, %v374_v38, 0.0  ;;  %v265_v40 = vsel %vm230_vm8, %v374_v38, 0.0  ;;  %v280_v43 = vsel %vm541_vm10, %v374_v38, 0.0  ;;  %v275_v44 = vsel %vm537_vm7, %v374_v38, 0.0 }
 0x266   :  { %v271_v41 = vsel %vm233_vm9, %v270_v39, 0.0  ;;  %v266_v42 = vsel %vm233_vm9, %v265_v40, 0.0  ;;  %v281_v45 = vsel %vm233_vm9, %v280_v43, 0.0  ;;  %v276_v46 = vsel %vm233_vm9, %v275_v44, 0.0 }
 0x267   :  { %272 = vadd.xlane.f32.xlu1 %v271_v41  ;;  %267 = vadd.xlane.f32.xlu0 %v266_v42 }
 0x26b   :  { %282 = vadd.xlane.f32.xlu1 %v281_v45  ;;  %277 = vadd.xlane.f32.xlu0 %v276_v46 }
 0x2f4   :  { %v273_v47 = vpop.xlane.xlu1 %272  ;;  %v268_v48 = vpop.xlane.xlu0 %267 }
 0x2f5   :  { %v269_v49 = vsel %vm230_vm8, %v268_v48, 1.0 }
 0x2f6   :  { %v274_v50 = vsel %vm545_vm11, %v273_v47, %v269_v49 }
 0x2f8   :  { %v283_v51 = vpop.xlane.xlu1 %282  ;;  %v278_v52 = vpop.xlane.xlu0 %277 }
 0x2f9   :  { %v279_v53 = vsel %vm537_vm7, %v278_v52, %v274_v50 }
 0x2fa   :  { %v284_v54 = vsel %vm541_vm10, %v283_v51, %v279_v53 }
 0x2fb   :  { %375 = vrcp.f32 %v284_v54 }
 0x305   :  { %v376_v55 = vpop.eup %375 }
 0x306   :  { %v286_v56 = vmul.f32 %v376_v55, %v284_v54 }
 0x308   :  { %v287_v57 = vsub.f32 2.0, %v286_v56 }
 0x30a   :  { %v288_v58 = vmul.f32 %v376_v55, %v287_v57 }
 0x30c   :  { %v289_v59 = vmul.f32 %v374_v38, %v288_v58 }
 0x30e   :  { %290 = vst.msk [vmem:[%s594_s5] sm:$0xff] %vm233_vm9, %v289_v59 }

</bundles_post_ra>
